<compile_context>
chip_gen: v7x
topology: tpu7x:2x2x1
jax: 0.10.0
libtpu: 0.0.40
codegen_flags: <defaults>
</compile_context>

<pallas_src>
import jax
import jax.numpy as jnp
from jax.experimental import pallas as pl
from jax.experimental.pallas import tpu as pltpu


def _round_up(a, b):
    return (a + b - 1) // b * b


def _make_kernel(block_length, stride_length, hs, nb, compute_dtype):
    def kernel(x_ref, w1_ref, b1_ref, w2_ref, b2_ref, o_ref):
        # x_ref : (T, hs)  native x dtype (cast per-slice below)
        # w1_ref: (D, H)   bf16, single-buffered        b1_ref: (1, H) f32 (+pos)
        # w2_ref: (H, hs)  bf16, single-buffered        b2_ref: (1, hs) f32
        # o_ref : (nb, hs) out dtype
        h = None
        for p in range(block_length):  # static unroll; block_length is small
            # Rows p, p+s, ..., p+(nb-1)*s of this head's (T, hs) slab — the
            # p-th position of every window — read straight from the resident
            # VMEM slab with a strided sublane load (no unfolded copy anywhere).
            xp = x_ref[pl.ds(p, nb, stride=stride_length), :]
            wp = w1_ref[pl.ds(p * hs, hs), :]           # static slice, free
            acc = jnp.dot(xp.astype(compute_dtype), wp,
                          preferred_element_type=jnp.float32)
            h = acc if h is None else h + acc
        h = h + b1_ref[...]
        # tanh-approx GELU: exp/tanh run on the EUP slot instead of the exact
        # erf VALU polynomial (the VALU saturates before the MXU at small D).
        h = jax.nn.gelu(h, approximate=True)
        # TODO(synk): dropout is eval-mode identity here (no PRNG mask applied).
        out = jnp.dot(h.astype(compute_dtype), w2_ref[...],
                      preferred_element_type=jnp.float32)
        out = out + b2_ref[...]
        o_ref[...] = out.astype(o_ref.dtype)
    return kernel


def compression_mlp_forward(x, params, *, block_length, stride_length,
                            compute_dtype=jnp.bfloat16):
    """x: (B, nh, T, hs). Returns (B, nh, num_blocks, hs) in x.dtype."""
    B, nh, T, hs = x.shape
    out_dtype = x.dtype
    if T < block_length:
        return jnp.empty((B, nh, 0, hs), dtype=out_dtype)

    nb = (T - block_length) // stride_length + 1
    D = block_length * hs
    BH = B * nh

    # x stays in HBM in its native layout & dtype: no unfold slab, no bf16
    # pre-cast pass, no jnp.pad copy (leading-dim reshape is free).
    x3 = x.reshape(BH, T, hs)

    # Weights bf16 (MXU-native); biases f32.  Positional embedding folded into
    # the fc1 bias: (x + pos) @ W1 + b1 == x @ W1 + (b1 + pos @ W1).
    w1 = params["w1"].astype(compute_dtype)                       # (D, H)
    w2 = params["w2"].astype(compute_dtype)                       # (H, hs)
    pos_flat = params["wpe"].reshape(1, D).astype(jnp.float32)
    b1_fold = (params["b1"].reshape(1, -1).astype(jnp.float32)
               + jnp.dot(pos_flat, params["w1"].astype(jnp.float32),
                         precision=jax.lax.Precision.HIGHEST))    # (1, H)
    b2 = params["b2"].reshape(1, -1).astype(jnp.float32)          # (1, hs)
    H = w1.shape[1]

    # VMEM budget: x/out double-buffered by the pipeline, weights/biases
    # single-buffered (pl.Buffered(1)), plus the f32 h temporary + margin.
    bx = jnp.dtype(x.dtype).itemsize
    bc = jnp.dtype(compute_dtype).itemsize
    bo = jnp.dtype(out_dtype).itemsize
    est = (2 * _round_up(T, 8) * _round_up(hs, 128) * bx          # x slab
           + 1 * _round_up(D, 8) * _round_up(H, 128) * bc         # w1
           + 8 * _round_up(H, 128) * 4                            # b1
           + 1 * _round_up(H, 8) * _round_up(hs, 128) * bc        # w2
           + 8 * 128 * 4                                          # b2
           + 2 * _round_up(nb, 8) * _round_up(hs, 128) * bo       # out
           + _round_up(nb, 8) * _round_up(H, 128) * 4)            # h (f32)
    vmem_limit = int(max(32 << 20, min(est + (8 << 20), 96 << 20)))
    # TODO(synk): for very large D*H (e.g. hs=128, block=32 -> 32 MiB bf16 w1)
    # add an inner "arbitrary" K grid axis over D so w1 streams in tk chunks
    # (needed to fit v7x's 64 MiB VMEM); not required at these sizes.

    cost = pl.CostEstimate(
        flops=int(2 * BH * nb * (D * H + H * hs)),
        transcendentals=int(BH * nb * H),
        bytes_accessed=int(BH * T * hs * bx + D * H * bc + H * hs * bc
                           + (H + hs) * 4 + BH * nb * hs * bo),
    )

    kernel = _make_kernel(block_length, stride_length, hs, nb, compute_dtype)
    const = lambda i: (0, 0)

    out3 = pl.pallas_call(
        kernel,
        out_shape=jax.ShapeDtypeStruct((BH, nb, hs), out_dtype),
        grid_spec=pltpu.PrefetchScalarGridSpec(
            num_scalar_prefetch=0,
            grid=(BH,),                              # one (batch, head) per step
            in_specs=[
                pl.BlockSpec((None, T, hs), lambda i: (i, 0, 0)),   # x slab
                pl.BlockSpec((D, H), const, pipeline_mode=pl.Buffered(1)),
                pl.BlockSpec((1, H), const, pipeline_mode=pl.Buffered(1)),
                pl.BlockSpec((H, hs), const, pipeline_mode=pl.Buffered(1)),
                pl.BlockSpec((1, hs), const, pipeline_mode=pl.Buffered(1)),
            ],
            out_specs=pl.BlockSpec((None, nb, hs), lambda i: (i, 0, 0)),
        ),
        compiler_params=pltpu.CompilerParams(
            dimension_semantics=("parallel",),
            vmem_limit_bytes=vmem_limit,
        ),
        cost_estimate=cost,
    )(x3, w1, b1_fold, w2, b2)

    return out3.reshape(B, nh, nb, hs)


def init_params(key, *, block_length, hs):
    """Deterministic parameter init mirroring the PyTorch module's shapes."""
    D = hs * block_length
    H = D  # hidden_dim = hs * block_length
    k_wpe, k_w1, k_b1, k_w2, k_b2 = jax.random.split(key, 5)
    bound1 = 1.0 / jnp.sqrt(D)
    bound2 = 1.0 / jnp.sqrt(H)
    return {
        # nn.Embedding default init: N(0, 1)
        "wpe": jax.random.normal(k_wpe, (block_length, hs), jnp.float32),
        # nn.Linear weights stored pre-transposed as (in, out)
        "w1": jax.random.uniform(k_w1, (D, H), jnp.float32, -bound1, bound1),
        "b1": jax.random.uniform(k_b1, (H,), jnp.float32, -bound1, bound1),
        "w2": jax.random.uniform(k_w2, (H, hs), jnp.float32, -bound2, bound2),
        "b2": jax.random.uniform(k_b2, (hs,), jnp.float32, -bound2, bound2),
    }
    # NOTE: residual_proj exists in __init__ but is unused in forward -> omitted.


def _reference(x, params, *, block_length, stride_length):
    """Pure-JAX f32 reference of the PyTorch forward (exact-erf GELU)."""
    B, nh, T, hs = x.shape
    num_blocks = (T - block_length) // stride_length + 1
    starts = jnp.arange(num_blocks) * stride_length
    idx = starts[:, None] + jnp.arange(block_length)[None, :]
    x_unf = x[:, :, idx, :] + params["wpe"][None, None, None]      # (B,nh,nb,l,hs)
    x_flat = x_unf.reshape(B, nh, num_blocks, block_length * hs)
    h = jnp.einsum("bntd,dh->bnth", x_flat, params["w1"],
                   precision=jax.lax.Precision.HIGHEST) + params["b1"]
    h = 0.5 * h * (1.0 + jax.lax.erf(h * 0.7071067811865476))
    out = jnp.einsum("bnth,hk->bntk", h, params["w2"],
                     precision=jax.lax.Precision.HIGHEST) + params["b2"]
    return out


if __name__ == "__main__":
    # Config: n_embd=32, n_head=4 -> hs=8; block_length=4; bias=True
    hs = 8
    B, nh, T = 2, 4, 8
    block_length = 4

    key = jax.random.PRNGKey(0)
    k_params, k_x = jax.random.split(key)
    params = init_params(k_params, block_length=block_length, hs=hs)
    x = jax.random.normal(k_x, (B, nh, T, hs), jnp.float32)

    # Exercise both the overlapping-window path and the stride==block path.
    for stride_length in (2, 4):
        out = compression_mlp_forward(
            x, params, block_length=block_length, stride_length=stride_length)
        out = jax.block_until_ready(out)

        num_blocks = (T - block_length) // stride_length + 1
        assert out.shape == (B, nh, num_blocks, hs), out.shape

        ref = _reference(x, params, block_length=block_length,
                         stride_length=stride_length)
        # bf16 MXU operands (f32 acc) + tanh-approx GELU vs exact-erf f32 ref.
        assert jnp.allclose(out.astype(jnp.float32), ref, atol=5e-2, rtol=5e-2), (
            float(jnp.max(jnp.abs(out.astype(jnp.float32) - ref))))

    print("KERNEL_OK")
</pallas_src>

<mosaic_0001>
module attributes {stable_mosaic.version = 11 : i64} {
  func.func @kernel(%arg0: i32, %arg1: memref<1x8x8xf32, #tpu.memory_space<vmem>>, %arg2: memref<32x32xbf16, #tpu.memory_space<vmem>>, %arg3: memref<1x32xf32, #tpu.memory_space<vmem>>, %arg4: memref<32x8xbf16, #tpu.memory_space<vmem>>, %arg5: memref<1x8xf32, #tpu.memory_space<vmem>>, %arg6: memref<1x3x8xf32, #tpu.memory_space<vmem>>) attributes {dimension_semantics = [#tpu.dimension_semantics<parallel>], iteration_bounds = array<i64: 8>, scalar_prefetch = 0 : i64, scratch_operands = 0 : i64, tpu.core_type = #tpu.core_type<tc>, window_params = [{transform_indices = @transform_0, window_bounds = array<i64: 1, 8, 8>}, {pipeline_mode = #tpu.pipeline_mode<synchronous>, transform_indices = @transform_1, window_bounds = array<i64: 32, 32>}, {pipeline_mode = #tpu.pipeline_mode<synchronous>, transform_indices = @transform_2, window_bounds = array<i64: 1, 32>}, {pipeline_mode = #tpu.pipeline_mode<synchronous>, transform_indices = @transform_3, window_bounds = array<i64: 32, 8>}, {pipeline_mode = #tpu.pipeline_mode<synchronous>, transform_indices = @transform_4, window_bounds = array<i64: 1, 8>}, {transform_indices = @transform_5, window_bounds = array<i64: 1, 3, 8>}]} {
    %c0 = arith.constant 0 : index
    %c0_0 = arith.constant 0 : index
    %c0_1 = arith.constant 0 : index
    %0 = tpu.strided_load %arg1[%c0, %c0_0, %c0_1] {strides = array<i32: 1, 2, 1>} : memref<1x8x8xf32, #tpu.memory_space<vmem>>, vector<1x3x8xf32>
    %1 = vector.shape_cast %0 : vector<1x3x8xf32> to vector<3x8xf32>
    %c0_2 = arith.constant 0 : index
    %c0_3 = arith.constant 0 : index
    %2 = vector.load %arg2[%c0_2, %c0_3] : memref<32x32xbf16, #tpu.memory_space<vmem>>, vector<8x32xbf16>
    %3 = arith.truncf %1 : vector<3x8xf32> to vector<3x8xbf16>
    %cst = arith.constant dense<0.000000e+00> : vector<3x32xf32>
    %4 = tpu.matmul %3, %2, %cst {dimension_numbers = #tpu.dot_dimension_numbers<[1], [0], [0], [1], [0, 0, 1, 1], [], []>} : vector<3x8xbf16>, vector<8x32xbf16>, vector<3x32xf32> -> vector<3x32xf32>
    %c0_4 = arith.constant 0 : index
    %c1 = arith.constant 1 : index
    %c0_5 = arith.constant 0 : index
    %5 = tpu.strided_load %arg1[%c0_4, %c1, %c0_5] {strides = array<i32: 1, 2, 1>} : memref<1x8x8xf32, #tpu.memory_space<vmem>>, vector<1x3x8xf32>
    %6 = vector.shape_cast %5 : vector<1x3x8xf32> to vector<3x8xf32>
    %c8 = arith.constant 8 : index
    %c0_6 = arith.constant 0 : index
    %7 = vector.load %arg2[%c8, %c0_6] : memref<32x32xbf16, #tpu.memory_space<vmem>>, vector<8x32xbf16>
    %8 = arith.truncf %6 : vector<3x8xf32> to vector<3x8xbf16>
    %cst_7 = arith.constant dense<0.000000e+00> : vector<3x32xf32>
    %9 = tpu.matmul %8, %7, %cst_7 {dimension_numbers = #tpu.dot_dimension_numbers<[1], [0], [0], [1], [0, 0, 1, 1], [], []>} : vector<3x8xbf16>, vector<8x32xbf16>, vector<3x32xf32> -> vector<3x32xf32>
    %10 = arith.addf %4, %9 : vector<3x32xf32>
    %c0_8 = arith.constant 0 : index
    %c2 = arith.constant 2 : index
    %c0_9 = arith.constant 0 : index
    %11 = tpu.strided_load %arg1[%c0_8, %c2, %c0_9] {strides = array<i32: 1, 2, 1>} : memref<1x8x8xf32, #tpu.memory_space<vmem>>, vector<1x3x8xf32>
    %12 = vector.shape_cast %11 : vector<1x3x8xf32> to vector<3x8xf32>
    %c16 = arith.constant 16 : index
    %c0_10 = arith.constant 0 : index
    %13 = vector.load %arg2[%c16, %c0_10] : memref<32x32xbf16, #tpu.memory_space<vmem>>, vector<8x32xbf16>
    %14 = arith.truncf %12 : vector<3x8xf32> to vector<3x8xbf16>
    %cst_11 = arith.constant dense<0.000000e+00> : vector<3x32xf32>
    %15 = tpu.matmul %14, %13, %cst_11 {dimension_numbers = #tpu.dot_dimension_numbers<[1], [0], [0], [1], [0, 0, 1, 1], [], []>} : vector<3x8xbf16>, vector<8x32xbf16>, vector<3x32xf32> -> vector<3x32xf32>
    %16 = arith.addf %10, %15 : vector<3x32xf32>
    %c0_12 = arith.constant 0 : index
    %c3 = arith.constant 3 : index
    %c0_13 = arith.constant 0 : index
    %17 = tpu.strided_load %arg1[%c0_12, %c3, %c0_13] {strides = array<i32: 1, 2, 1>} : memref<1x8x8xf32, #tpu.memory_space<vmem>>, vector<1x3x8xf32>
    %18 = vector.shape_cast %17 : vector<1x3x8xf32> to vector<3x8xf32>
    %c24 = arith.constant 24 : index
    %c0_14 = arith.constant 0 : index
    %19 = vector.load %arg2[%c24, %c0_14] : memref<32x32xbf16, #tpu.memory_space<vmem>>, vector<8x32xbf16>
    %20 = arith.truncf %18 : vector<3x8xf32> to vector<3x8xbf16>
    %cst_15 = arith.constant dense<0.000000e+00> : vector<3x32xf32>
    %21 = tpu.matmul %20, %19, %cst_15 {dimension_numbers = #tpu.dot_dimension_numbers<[1], [0], [0], [1], [0, 0, 1, 1], [], []>} : vector<3x8xbf16>, vector<8x32xbf16>, vector<3x32xf32> -> vector<3x32xf32>
    %22 = arith.addf %16, %21 : vector<3x32xf32>
    %c0_16 = arith.constant 0 : index
    %c0_17 = arith.constant 0 : index
    %23 = vector.load %arg3[%c0_16, %c0_17] : memref<1x32xf32, #tpu.memory_space<vmem>>, vector<1x32xf32>
    %24 = vector.broadcast %23 : vector<1x32xf32> to vector<3x32xf32>
    %25 = arith.addf %22, %24 : vector<3x32xf32>
    %26 = arith.mulf %25, %25 : vector<3x32xf32>
    %27 = arith.mulf %25, %26 : vector<3x32xf32>
    %cst_18 = arith.constant 4.471500e-02 : f32
    %28 = vector.broadcast %cst_18 : f32 to vector<3x32xf32>
    %29 = arith.mulf %28, %27 : vector<3x32xf32>
    %30 = arith.addf %25, %29 : vector<3x32xf32>
    %cst_19 = arith.constant 0.797884583 : f32
    %31 = vector.broadcast %cst_19 : f32 to vector<3x32xf32>
    %32 = arith.mulf %31, %30 : vector<3x32xf32>
    %33 = math.tanh %32 : vector<3x32xf32>
    %cst_20 = arith.constant 1.000000e+00 : f32
    %34 = vector.broadcast %cst_20 : f32 to vector<3x32xf32>
    %35 = arith.addf %34, %33 : vector<3x32xf32>
    %cst_21 = arith.constant 5.000000e-01 : f32
    %36 = vector.broadcast %cst_21 : f32 to vector<3x32xf32>
    %37 = arith.mulf %36, %35 : vector<3x32xf32>
    %38 = arith.mulf %25, %37 : vector<3x32xf32>
    %39 = arith.truncf %38 : vector<3x32xf32> to vector<3x32xbf16>
    %c0_22 = arith.constant 0 : index
    %c0_23 = arith.constant 0 : index
    %40 = vector.load %arg4[%c0_22, %c0_23] : memref<32x8xbf16, #tpu.memory_space<vmem>>, vector<32x8xbf16>
    %cst_24 = arith.constant dense<0.000000e+00> : vector<3x8xf32>
    %41 = tpu.matmul %39, %40, %cst_24 {dimension_numbers = #tpu.dot_dimension_numbers<[1], [0], [0], [1], [0, 0, 1, 1], [], []>} : vector<3x32xbf16>, vector<32x8xbf16>, vector<3x8xf32> -> vector<3x8xf32>
    %c0_25 = arith.constant 0 : index
    %c0_26 = arith.constant 0 : index
    %42 = vector.load %arg5[%c0_25, %c0_26] : memref<1x8xf32, #tpu.memory_space<vmem>>, vector<1x8xf32>
    %43 = vector.broadcast %42 : vector<1x8xf32> to vector<3x8xf32>
    %44 = arith.addf %41, %43 : vector<3x8xf32>
    %c0_27 = arith.constant 0 : index
    %c0_28 = arith.constant 0 : index
    %c0_29 = arith.constant 0 : index
    %45 = vector.load %arg6[%c0_27, %c0_28, %c0_29] : memref<1x3x8xf32, #tpu.memory_space<vmem>>, vector<1x3x8xf32>
    %46 = vector.shape_cast %45 : vector<1x3x8xf32> to vector<3x8xf32>
    %47 = vector.shape_cast %44 : vector<3x8xf32> to vector<1x3x8xf32>
    tpu.vector_store %arg6[%c0_27, %c0_28, %c0_29], %47 {strides = array<i32>} : memref<1x3x8xf32, #tpu.memory_space<vmem>>, vector<1x3x8xf32>,
    return
  }
  func.func @transform_0(%arg0: i32) -> (i32, i32, i32) {
    %c0_i32 = arith.constant 0 : i32
    %c0_i32_0 = arith.constant 0 : i32
    %c0_i32_1 = arith.constant 0 : i32
    return %arg0, %c0_i32, %c0_i32_0 : i32, i32, i32
  }
  func.func @transform_1(%arg0: i32) -> (i32, i32) {
    %c0_i32 = arith.constant 0 : i32
    %c0_i32_0 = arith.constant 0 : i32
    %c0_i32_1 = arith.constant 0 : i32
    return %c0_i32, %c0_i32_0 : i32, i32
  }
  func.func @transform_2(%arg0: i32) -> (i32, i32) {
    %c0_i32 = arith.constant 0 : i32
    %c0_i32_0 = arith.constant 0 : i32
    %c0_i32_1 = arith.constant 0 : i32
    return %c0_i32, %c0_i32_0 : i32, i32
  }
  func.func @transform_3(%arg0: i32) -> (i32, i32) {
    %c0_i32 = arith.constant 0 : i32
    %c0_i32_0 = arith.constant 0 : i32
    %c0_i32_1 = arith.constant 0 : i32
    return %c0_i32, %c0_i32_0 : i32, i32
  }
  func.func @transform_4(%arg0: i32) -> (i32, i32) {
    %c0_i32 = arith.constant 0 : i32
    %c0_i32_0 = arith.constant 0 : i32
    %c0_i32_1 = arith.constant 0 : i32
    return %c0_i32, %c0_i32_0 : i32, i32
  }
  func.func @transform_5(%arg0: i32) -> (i32, i32, i32) {
    %c0_i32 = arith.constant 0 : i32
    %c0_i32_0 = arith.constant 0 : i32
    %c0_i32_1 = arith.constant 0 : i32
    return %arg0, %c0_i32, %c0_i32_0 : i32, i32, i32
  }
}

</mosaic_0001>

<bundles_post_ra>
// kernel: tpu_custom_call.1
= control target key start
LH: loop header
LB: loop body
LE: loop exit
PB: predicated region body
PF: predicated region fallthrough
CT: control target
= control target key end

     0   :  { %10 = vsyncpa [#allocation3], 0  ;;  %s955_s0 = inlined_call_operand.hbm [shape: f32[8,8,8], index: 0, kind: input, shape index: {}]   ;;  %s956_s1 = inlined_call_operand.vmem [shape: bf16[32,32], index: 1, kind: input, shape index: {}]   ;;  %s957_s2 = inlined_call_operand.vmem [shape: f32[1,32], index: 2, kind: input, shape index: {}]   ;;  %s958_s3 = inlined_call_operand.vmem [shape: bf16[32,8], index: 3, kind: input, shape index: {}]   ;;  %s959_s4 = inlined_call_operand.vmem [shape: f32[1,8], index: 4, kind: input, shape index: {}]   ;;  %s960_s5 = inlined_call_operand.vmem [shape: f32[8,3,8], index: 5, kind: output, shape index: {}]  }
   0x1   :  { %12 = vsyncpa [#allocation3 + $0x1], 0  ;;  %s805_s18 = smov 0   ;;  %s807_s19 = smov 0  }
   0x2   :  { %s809_s20 = smov 0   ;;  %s811_s21 = smov 0  }
   0x3 LB: > { %s824_s22 = sadd.s32 4294967295, %s770_s21   ;;  %s827_s23 = sadd.s32 1, %s770_s21   ;;  %s770_s21 = sphi %s811_s21, %s968_s21   ;;  %s766_s20 = sphi %s809_s20, %s967_s20   ;;  %s762_s19 = sphi %s807_s19, %s966_s19   ;;  %s758_s18 = sphi %s805_s18, %s965_s18  }
   0x4   : > { %s22_s24 = ssub.s32 %s770_s21, %s827_s23  ;;  %s25_s25 = sadd.s32 1, %s766_s20 }
   0x5   : > { %p23_p0 = scmp.eq.s32.totalorder %s22_s24, 0  ;;  %p32_p1 = scmp.ne.s32.totalorder %s766_s20, %s762_s19 }
   0x6   : > { %p33_p2 = scmp.eq.s32.totalorder %s770_s21, 0  ;;  %p38_p3 = scmp.ne.s32.totalorder %s762_s19, %s758_s18 }
   0x7   : > { %s837_s26 = scalar_select %p23_p0, %s766_s20, %s25_s25  }
   0x8   : > { %p34_p4 = por %p33_p2, %p32_p1  ;;  %p39_p5 = scmp.eq.s32.totalorder %s824_s22, 0 }
   0x9   : > { %p667_p6 = scmp.lt.s32.totalorder %s770_s21, 8  ;;  %s184_s28 = sand.u32 1, %s766_s20  }
   0xa   : > { %p841_p7 = por %p39_p5, %p38_p3  ;;  %s599_s29 = sshll.u32 %s184_s28, 3 }
   0xb   : > { %s600_s30 = sshll.u32 %s770_s21, 7  ;;  %s188_s9 = scalar_lea.vmem [#allocation2], %s599_s29 }
   0xc   : > { %s850_s8 = scalar_lea.hbm %s955_s0, %s600_s30  ;;  %s195_s10 = sshll.u32 %s188_s9, 4  ;;  %s852_s10 = int_to_ptr.vmem [resolvable:$true] %s195_s10 }
   0xd   : > { %p854_p8 = pnand %p667_p6, %p34_p4  ;;  %s185_s12 = scalar_lea.sflag [#allocation3], %s184_s28 }
   0xe   : > { %s706_s13 = scalar_lea.hbm %s850_s8, 128  ;;  %s711_s16 = scalar_lea.hbm %s955_s0, 1024 }
   0xf   : > { %p707_p11 = scmp.ne.s32.totalorder %s850_s8, %s706_s13  ;;  %p708_p12 = pneg %p854_p8 }
  0x10   : > { %p712_p1 = scmp.lt.u32.totalorder %s850_s8, %s955_s0  ;;  %p713_p2 = scmp.lt.u32.totalorder %s711_s16, %s706_s13 }
  0x11   : > { %p709_p13 = pnand %p708_p12, %p707_p11  ;;  %p715_p4 = scmp.lt.u32.totalorder %s706_s13, %s850_s8 }
  0x12   : > { %p714_p3 = por %p713_p2, %p712_p1 }
  0x13   : > { %p710_p0 = pneg %p709_p13 }
  0x14   : > { %p716_p5 = por %p715_p4, %p714_p3 }
  0x16   : > { %p717_p6 = pnand %p716_p5, %p710_p0 }
  0x18   : > { %720 = shalt.err (!%p717_p6)
}
  0x19   : > { %s721_s24 = scalar_lea.vmem %s852_s10, 128  ;;  %s772_s25 = smov [#allocation2]  }
  0x1a   : > { %p722_p11 = scmp.ne.s32.totalorder %s852_s10, %s721_s24  ;;  %s726_s28 = sshll.u32 %s772_s25, 4  ;;  %s727_s28 = int_to_ptr.vmem [resolvable:$false] %s726_s28 }
  0x1b   : > { %s728_s29 = scalar_lea.vmem %s727_s28, 256  ;;  %p729_p10 = scmp.lt.s32.totalorder %s852_s10, %s727_s28 }
  0x1c   : > { %p724_p13 = pnand %p722_p11, %p708_p12  ;;  %p730_p1 = scmp.lt.s32.totalorder %s728_s29, %s721_s24 }
  0x1e   : > { %p725_p9 = pneg %p724_p13  ;;  %p731_p2 = por %p730_p1, %p729_p10 }
  0x20   : > { %p732_p3 = pnand %p731_p2, %p725_p9 }
  0x22   : > { %735 = shalt.err (!%p732_p3)
}
  0x23   : > { %666 = dma.hbm_to_vmem [thread:$0]  (!%p854_p8), %s850_s8, 128, %s852_s10, %s185_s12  }
  0x24   : > { %p963_p0 = scmp.lt.s32.totalorder %s770_s21, 9  ;;  %p964_p4 = scmp.ge.s32.totalorder %s770_s21, 1 }
  0x26   : > { %p201_p12 = pnand %p964_p4, %p963_p0 }
  0x27   : > { %s206_s30 = sand.u32 (!%p201_p12), 1, %s762_s19  }
  0x28   : > { %204 = sbr.rel (%p201_p12) target bundleno = 524 (0x20c), region = 40  ;;  %s602_s6 = sshll.u32 (!%p201_p12), %s206_s30, 3 }
  0x29   : > { %s207_s7 = scalar_lea.sflag (!%p201_p12), [#allocation3], %s206_s30  ;;  %s890_s9 = scalar_lea.vmem (!%p201_p12), [#allocation2], %s602_s6 }
  0x2f   : > { %753 = dma.done.wait (%p841_p7), %s207_s7, 128  }
  0x30   : > { %755 = vsyncadd (%p841_p7), %s207_s7, 4294967168  ;;  %v773_v0 = vmov 0.0   ;;  %vm774_vm0 = vmmov 0   ;;  %vm252_vm1 = vcmask 1043456   ;;  %v246_v1 = vld [vmem:[%s956_s1 + $0x4] sm:$0xf] }
  0x31   : > { %629 = vmatprep.subr.bf16.mxu0 %v773_v0  ;;  %635 = vmatprep.subr.bf16.mxu1 %v773_v0  ;;  %v242_v2 = vld [vmem:[%s956_s1] sm:$0xf]  ;;  %v344_v3 = vld [vmem:[%s956_s1 + $0x8] sm:$0xf]  ;;  %v254_v4 = vsel %vm252_vm1, %v246_v1, 0  ;;  %vm248_vm2 = vcmask 64512  }
  0x32   : > { %631 = vmatprep.mubr.msk.bf16.mxu0 %vm774_vm0, %v773_v0  ;;  %637 = vmatprep.mubr.msk.bf16.mxu1 %vm774_vm0, %v773_v0  ;;  %v300_v5 = vsel %vm252_vm1, %v242_v2, 0  ;;  %v604_v6 = vld [vmem:[%s890_s9 + $0x1] ss:$2 sm:$0x7]  ;;  %v350_v11 = vsel %vm252_vm1, %v344_v3, 0  ;;  %vm485_vm3 = vcmask 261120  }
  0x33   : > { %630 = vmatpush3.bf16.msra.mxu0 %v254_v4  ;;  %636 = vmatpush3.bf16.msra.mxu1 %v300_v5  ;;  %v247_v7 = vpack.c.bf16 %v604_v6, %v604_v6  ;;  %v241_v8 = vld [vmem:[%s890_s9] ss:$2 sm:$0x7]  ;;  %v609_v14 = vld [vmem:[%s890_s9 + $0x3] ss:$2 sm:$0x7] }
  0x34   : > { %v395_v9 = vld [vmem:[%s956_s1 + $0xc] sm:$0xf]  ;;  %v243_v10 = vpack.c.bf16 %v241_v8, %v241_v8  ;;  %641 = vmatprep.subr.bf16.mxu0 %v773_v0  ;;  %647 = vmatprep.subr.bf16.mxu1 %v773_v0  ;;  %v396_v16 = vpack.c.bf16 %v609_v14, %v609_v14  ;;  %v702_v17 = vld [vmem:[%s958_s3] sm:$0xff]   ;;  %p236_p7 = scmp.lt.s32.totalorder %s824_s22, 7  ;;  %vm529_vm4 = vcmask 59392  }
  0x35   : > { %v401_v12 = vsel %vm252_vm1, %v395_v9, 0  ;;  %v607_v13 = vld [vmem:[%s890_s9 + $0x2] ss:$2 sm:$0x7]  ;;  %v611_v33 = vld [vmem:[%s957_s2] ss:$0 sm:$0xff] }
  0x36   : > { %632 = vmatmul.mubr.msk.bf16.vlgmr.msra.gmra.mrb[0].mxu0 %vm248_vm2, %v247_v7  ;;  %638 = vmatmul.mubr.msk.bf16.vlgmr.msra.gmra.mrb[0].mxu1 %vm248_vm2, %v243_v10  ;;  %v345_v15 = vpack.c.bf16 %v607_v13, %v607_v13  ;;  %v703_v18 = vld [vmem:[%s958_s3 + $0x8] sm:$0xff]   ;;  %s970_s22 = smov (!%p236_p7, %s824_s22), 7  ;;  %v612_v50 = vld [vmem:[%s959_s4] ss:$0 sm:$0xff] }
  0x37   : > { %642 = vmatpush3.bf16.msra.mxu0 %v350_v11  ;;  %648 = vmatpush3.bf16.msra.mxu1 %v401_v12  ;;  %s603_s28 = sshll.u32 %s970_s22, 2 }
  0x38   : > { %643 = vmatprep.mubr.msk.bf16.mxu0 %vm774_vm0, %v773_v0  ;;  %649 = vmatprep.mubr.msk.bf16.mxu1 %vm774_vm0, %v773_v0  ;;  %s239_s9 = scalar_lea.vmem %s960_s5, %s603_s28 }
  0x39   : > { %653 = vmatprep.subr.bf16.mxu0 %v773_v0 }
  0x3e   : > { %644 = vmatmul.mubr.msk.bf16.vlgmr.msra.gmra.mrb[4].mxu0 %vm248_vm2, %v345_v15  ;;  %650 = vmatmul.mubr.msk.bf16.vlgmr.msra.gmra.mrb[4].mxu1 %vm248_vm2, %v396_v16 }
  0x3f   : > { %657 = vmatprep.mubr.msk.bf16.mxu0 %vm774_vm0, %v773_v0  ;;  %654 = vmatpush3.bf16.msra.mxu0 %v702_v17 }
  0x40   : > { %655 = vmatprep.subr.bf16.mxu0 %v773_v0 }
  0x43   : > { %656 = vmatpush3.bf16.msra.mxu0 %v703_v18 }
 0x109   : > { %v290_v19 = vpop.f32.mrb[0].mxu0  ;;  %v336_v20 = vpop.f32.mrb[0].mxu1 }
 0x10a   : > { %v337_v21 = vadd.f32 %v336_v20, %v290_v19  ;;  %v633_v22 = vpop.f32.mrb[1].mxu0  ;;  %v639_v23 = vpop.f32.mrb[1].mxu1 }
 0x10b   : > { %v293_v24 = vpop.f32.mrb[2].mxu0  ;;  %v339_v25 = vpop.f32.mrb[2].mxu1 }
 0x10c   : > { %v634_v26 = vpop.f32.mrb[3].mxu0  ;;  %v640_v27 = vpop.f32.mrb[3].mxu1 }
 0x111   : > { %v386_v28 = vpop.f32.mrb[4].mxu0  ;;  %v437_v29 = vpop.f32.mrb[4].mxu1 }
 0x112   : > { %v392_v30 = vadd.f32 %v386_v28, %v337_v21  ;;  %v645_v31 = vpop.f32.mrb[5].mxu0  ;;  %v651_v32 = vpop.f32.mrb[5].mxu1 }
 0x113   : > { %v389_v34 = vpop.f32.mrb[6].mxu0  ;;  %v440_v35 = vpop.f32.mrb[6].mxu1 }
 0x114   : > { %v443_v36 = vadd.f32 %v437_v29, %v392_v30  ;;  %v646_v37 = vpop.f32.mrb[7].mxu0  ;;  %v652_v38 = vpop.f32.mrb[7].mxu1 }
 0x116   : > { %v451_v39 = vadd.f32 %v611_v33, %v443_v36 }
 0x118   : > { %v452_v40 = vmul.f32 %v451_v39, %v451_v39 }
 0x11a   : > { %v453_v41 = vmul.f32 %v452_v40, %v451_v39 }
 0x11c   : > { %v454_v42 = vmul.f32 0.044715, %v453_v41 }
 0x11e   : > { %v455_v43 = vadd.f32 %v454_v42, %v451_v39 }
 0x120   : > { %v456_v44 = vmul.f32 0.7978846, %v455_v43 }
 0x122   : > { %704 = vtanh.f32 %v456_v44 }
 0x12c   : > { %v705_v45 = vpop.eup %704 }
 0x12d   : > { %v458_v46 = vadd.f32 1.0, %v705_v45 }
 0x12f   : > { %v459_v47 = vmul.f32 0.5, %v458_v46 }
 0x131   : > { %v460_v48 = vmul.f32 %v459_v47, %v451_v39 }
 0x133   : > { %v461_v49 = vpack.c.bf16 %v460_v48, %v460_v48 }
 0x135   : > { %658 = vmatmul.mubr.msk.bf16.vlgmr.msra.gmra.mrb[8].mxu0 %vm485_vm3, %v461_v49 }
 0x208   : > { %v523_v51 = vpop.f32.mrb[8].mxu0 }
 0x209   : > { %v524_v52 = vadd.f32 %v612_v50, %v523_v51  ;;  %v659_v53 = vpop.f32.mrb[9].mxu0 }
 0x20a   : > { %v526_v54 = vpop.f32.mrb[10].mxu0 }
 0x20b   : > { %530 = vst.msk [vmem:[%s239_s9] sm:$0x7] %vm529_vm4, %v524_v52  ;;  %v660_v55 = vpop.f32.mrb[11].mxu0 }
 0x20c PF: > { %p15_p8 = scmp.ge.s32.totalorder %s827_s23, 10   ;;  %s965_s18 = smov %s762_s19 }
 0x20d   : > { %s966_s19 = smov %s766_s20  ;;  %s967_s20 = smov %s837_s26 }
 0x20e   : > { %s968_s21 = smov %s827_s23  ;;  %17 = sbr.rel (!%p15_p8) target bundleno = 3 (0x3), region = 83 }
 0x215   :  { %550 = vsyncpa [#allocation3], 1 }
 0x216   :  { %552 = vsyncpa [#allocation3 + $0x1], 1 }

</bundles_post_ra>
